<compile_context>
chip_gen: v7x
topology: tpu7x:2x2x1
jax: 0.10.0
libtpu: 0.0.40
codegen_flags: <defaults>
</compile_context>

<pallas_src>
import functools

import jax
import jax.numpy as jnp
from jax.experimental import pallas as pl
from jax.experimental.pallas import tpu as pltpu


def _lstm_cell_kernel(xh_ref, c_ref, w_ref, b_ref, goal_ref, hc_ref,
                      *, hidden_dim, n_agents):
    """Fused LSTM cell step. Gate columns are pre-permuted to [i, f, o, g]."""
    H = hidden_dim

    # Single MXU matmul: (B, D+H) @ (D+H, 4H) -> (B, 4H), f32 accumulation.
    gates = (
        jnp.dot(xh_ref[...], w_ref[...], preferred_element_type=jnp.float32)
        + b_ref[...]
    )

    # One wide sigmoid over the contiguous [i, f, o] block, one tanh for g.
    sig = jax.nn.sigmoid(gates[:, : 3 * H])     # (B, 3H)
    g_g = jnp.tanh(gates[:, 3 * H: 4 * H])      # (B, H)
    i_g = sig[:, 0 * H: 1 * H]
    f_g = sig[:, 1 * H: 2 * H]
    o_g = sig[:, 2 * H: 3 * H]

    c = c_ref[...]
    c_new = f_g * c + i_g * g_g
    h_new = o_g * jnp.tanh(c_new)

    # Lane-dense goal output: h_new repeated across agents -> (B, n_agents*H).
    goal_ref[...] = jnp.tile(h_new, (1, n_agents)).astype(goal_ref.dtype)
    # Packed recurrent-state output: [h_new | c_new] -> (B, 2H).
    hc_ref[...] = jnp.concatenate([h_new, c_new], axis=-1).astype(hc_ref.dtype)


def lstm_manager_step_pallas(x, h, c, w_cat, bias_row, n_agents):
    """x:(B,D), h/c:(B,H), w_cat:(D+H,4H) [gate order i,f,o,g], bias_row:(1,4H).

    Returns goal:(B, n_agents, H), h_new:(B,H), c_new:(B,H).
    """
    B, D = x.shape
    H = h.shape[-1]

    # Concatenate x and h in the wrapper (XLA fuses this) so the kernel does a
    # single matmul against the pre-concatenated weight.
    xh = jnp.concatenate([x, h], axis=-1)               # (B, D+H)

    vmem = pl.BlockSpec(memory_space=pltpu.MemorySpace.VMEM)
    kernel = functools.partial(_lstm_cell_kernel, hidden_dim=H,
                               n_agents=n_agents)

    cost = pl.CostEstimate(
        flops=2 * B * (D + H) * 4 * H,
        transcendentals=B * 5 * H,                      # 3 sigmoid + 2 tanh / row
        bytes_accessed=4 * (B * (D + H) + B * H + (D + H) * 4 * H + 4 * H
                            + B * n_agents * H + B * 2 * H),
    )

    goal_flat, hc = pl.pallas_call(
        kernel,
        out_shape=(
            jax.ShapeDtypeStruct((B, n_agents * H), jnp.float32),
            jax.ShapeDtypeStruct((B, 2 * H), jnp.float32),
        ),
        in_specs=[vmem, vmem, vmem, vmem],
        out_specs=(vmem, vmem),
        cost_estimate=cost,
    )(xh, c, w_cat, bias_row)

    h_new = hc[:, :H]
    c_new = hc[:, H:]
    goal = goal_flat.reshape(B, n_agents, H)
    return goal, h_new, c_new


class FeUdalManagerPallas:
    """JAX/Pallas port of FeUdalManager (single-layer LSTM manager)."""

    def __init__(self, input_shape, n_agents, manager_hidden_dim,
                 dilation_rate=3, seed=0):
        self.n_agents = n_agents
        self.hidden_dim = manager_hidden_dim
        self.input_dim = input_shape
        self.dilation_rate = dilation_rate
        self.last_goal = None
        self.last_hidden = None

        # Deterministic parameter init (mimics nn.LSTM param shapes):
        #   weight_ih_l0: (4H, D), weight_hh_l0: (4H, H),
        #   bias_ih_l0:   (4H,),   bias_hh_l0:   (4H,)   — gate order [i,f,g,o].
        k = jax.random.PRNGKey(seed)
        k1, k2, k3, k4 = jax.random.split(k, 4)
        H, D = manager_hidden_dim, input_shape
        bound = 1.0 / jnp.sqrt(jnp.float32(H))
        w_ih = jax.random.uniform(k1, (4 * H, D), jnp.float32, -bound, bound)
        w_hh = jax.random.uniform(k2, (4 * H, H), jnp.float32, -bound, bound)
        b_ih = jax.random.uniform(k3, (4 * H,), jnp.float32, -bound, bound)
        b_hh = jax.random.uniform(k4, (4 * H,), jnp.float32, -bound, bound)

        # Keep PyTorch-order copies around for the pure-JAX reference check.
        self._w_ih, self._w_hh = w_ih, w_hh
        self._b_ih, self._b_hh = b_ih, b_hh

        # Permute gate rows from PyTorch order [i, f, g, o] to [i, f, o, g] so
        # the kernel can apply one contiguous sigmoid over the first 3H lanes.
        perm = jnp.concatenate([
            jnp.arange(0 * H, 1 * H),   # i
            jnp.arange(1 * H, 2 * H),   # f
            jnp.arange(3 * H, 4 * H),   # o
            jnp.arange(2 * H, 3 * H),   # g
        ])
        w_ih_p = w_ih[perm]                     # (4H, D)
        w_hh_p = w_hh[perm]                     # (4H, H)
        b_p = (b_ih + b_hh)[perm]               # (4H,)

        # Fused, pre-transposed weight: [W_ih^T ; W_hh^T] -> (D+H, 4H),
        # so the kernel needs a single lane-dense matmul.
        # TODO(synk): cast to bfloat16 on v6e/v7x (and N-tile for H>=1024 on
        # v7x) if this manager is scaled beyond toy hidden sizes.
        self.w_cat = jnp.concatenate([w_ih_p.T, w_hh_p.T], axis=0)  # (D+H, 4H)
        self.bias_row = jnp.asarray(b_p[None, :])                   # (1, 4H)

    def init_hidden(self, batch_size=1):
        H = self.hidden_dim
        return (jnp.zeros((1, batch_size, H), jnp.float32),
                jnp.zeros((1, batch_size, H), jnp.float32))

    def forward(self, state, hidden_states_manager, time_step):
        """state: (B, D); hidden: ((1,B,H),(1,B,H)); time_step: python int."""
        if time_step % self.dilation_rate == 0:
            h0, c0 = hidden_states_manager
            B = state.shape[0]
            h0_2d = h0.reshape(B, self.hidden_dim)
            c0_2d = c0.reshape(B, self.hidden_dim)
            goal, h_new, c_new = lstm_manager_step_pallas(
                state.astype(jnp.float32), h0_2d, c0_2d,
                self.w_cat, self.bias_row, self.n_agents)
            new_hidden = (h_new[None, :, :], c_new[None, :, :])
            self.last_goal = goal
            self.last_hidden = new_hidden
        else:
            goal = self.last_goal
            new_hidden = self.last_hidden
        return goal, new_hidden


def _lstm_cell_ref(x, h, c, w_ih, w_hh, b_ih, b_hh):
    """Pure-JAX reference with PyTorch nn.LSTM gate order [i, f, g, o]."""
    gates = x @ w_ih.T + h @ w_hh.T + b_ih + b_hh
    H = h.shape[-1]
    i = jax.nn.sigmoid(gates[:, 0 * H:1 * H])
    f = jax.nn.sigmoid(gates[:, 1 * H:2 * H])
    g = jnp.tanh(gates[:, 2 * H:3 * H])
    o = jax.nn.sigmoid(gates[:, 3 * H:4 * H])
    c_new = f * c + i * g
    h_new = o * jnp.tanh(c_new)
    return h_new, c_new


if __name__ == "__main__":
    # Small, forward-consistent shapes: batch=2, input_dim=32, hidden=32,
    # 4 agents -> goal lane width n_agents*H = 128 (lane-dense output).
    B, D, H, N_AGENTS = 2, 32, 32, 4

    mgr = FeUdalManagerPallas(input_shape=D, n_agents=N_AGENTS,
                              manager_hidden_dim=H, dilation_rate=3, seed=0)

    key = jax.random.PRNGKey(0)
    state = jax.random.normal(key, (B, D), jnp.float32)
    hidden = mgr.init_hidden(batch_size=B)

    # time_step = 0 -> compute path (fused LSTM step in Pallas).
    goal, new_hidden = mgr.forward(state, hidden, time_step=0)
    jax.block_until_ready(goal)
    jax.block_until_ready(new_hidden[0])
    jax.block_until_ready(new_hidden[1])

    # time_step = 1 -> cached path (matches PyTorch sparse-update semantics).
    # NOTE: do not rebind `new_hidden` (e.g. via tree_map) before this call,
    # otherwise the object-identity cache check below is meaningless.
    goal_cached, hidden_cached = mgr.forward(state, new_hidden, time_step=1)

    # Correctness check against pure-JAX reference (PyTorch gate order).
    h_ref, c_ref = _lstm_cell_ref(state,
                                  hidden[0].reshape(B, H),
                                  hidden[1].reshape(B, H),
                                  mgr._w_ih, mgr._w_hh, mgr._b_ih, mgr._b_hh)
    goal_ref = jnp.broadcast_to(h_ref[:, None, :], (B, N_AGENTS, H))

    assert goal.shape == (B, N_AGENTS, H)
    assert new_hidden[0].shape == (1, B, H) and new_hidden[1].shape == (1, B, H)
    assert jnp.allclose(goal, goal_ref, atol=1e-5, rtol=1e-5)
    assert jnp.allclose(new_hidden[0][0], h_ref, atol=1e-5, rtol=1e-5)
    assert jnp.allclose(new_hidden[1][0], c_ref, atol=1e-5, rtol=1e-5)
    # Cached path must return the exact same objects (sparse-update semantics).
    assert goal_cached is goal and hidden_cached is new_hidden

    print("KERNEL_OK")
</pallas_src>

<mosaic_0001>
module attributes {stable_mosaic.version = 11 : i64} {
  func.func @_lstm_cell_kernel(%arg0: memref<2x64xf32, #tpu.memory_space<vmem>>, %arg1: memref<2x32xf32, #tpu.memory_space<vmem>>, %arg2: memref<64x128xf32, #tpu.memory_space<vmem>>, %arg3: memref<1x128xf32, #tpu.memory_space<vmem>>, %arg4: memref<2x128xf32, #tpu.memory_space<vmem>>, %arg5: memref<2x64xf32, #tpu.memory_space<vmem>>) attributes {dimension_semantics = [], scalar_prefetch = 0 : i64, scratch_operands = 0 : i64, tpu.core_type = #tpu.core_type<tc>} {
    %c0 = arith.constant 0 : index
    %c0_0 = arith.constant 0 : index
    %0 = vector.load %arg0[%c0, %c0_0] : memref<2x64xf32, #tpu.memory_space<vmem>>, vector<2x64xf32>
    %c0_1 = arith.constant 0 : index
    %c0_2 = arith.constant 0 : index
    %1 = vector.load %arg2[%c0_1, %c0_2] : memref<64x128xf32, #tpu.memory_space<vmem>>, vector<64x128xf32>
    %cst = arith.constant dense<0.000000e+00> : vector<2x128xf32>
    %2 = tpu.matmul %0, %1, %cst {dimension_numbers = #tpu.dot_dimension_numbers<[1], [0], [0], [1], [0, 0, 1, 1], [], []>} : vector<2x64xf32>, vector<64x128xf32>, vector<2x128xf32> -> vector<2x128xf32>
    %c0_3 = arith.constant 0 : index
    %c0_4 = arith.constant 0 : index
    %3 = vector.load %arg3[%c0_3, %c0_4] : memref<1x128xf32, #tpu.memory_space<vmem>>, vector<1x128xf32>
    %4 = vector.broadcast %3 : vector<1x128xf32> to vector<2x128xf32>
    %5 = arith.addf %2, %4 : vector<2x128xf32>
    %6 = vector.extract_strided_slice %5 {offsets = [0, 0], sizes = [2, 96], strides = [1, 1]} : vector<2x128xf32> to vector<2x96xf32>
    %7 = arith.negf %6 : vector<2x96xf32>
    %8 = math.exp %7 : vector<2x96xf32>
    %cst_5 = arith.constant 1.000000e+00 : f32
    %9 = vector.broadcast %cst_5 : f32 to vector<2x96xf32>
    %10 = arith.addf %9, %8 : vector<2x96xf32>
    %11 = arith.divf %9, %10 : vector<2x96xf32>
    %12 = vector.extract_strided_slice %5 {offsets = [0, 96], sizes = [2, 32], strides = [1, 1]} : vector<2x128xf32> to vector<2x32xf32>
    %13 = math.tanh %12 : vector<2x32xf32>
    %14 = vector.extract_strided_slice %11 {offsets = [0, 0], sizes = [2, 32], strides = [1, 1]} : vector<2x96xf32> to vector<2x32xf32>
    %15 = vector.extract_strided_slice %11 {offsets = [0, 32], sizes = [2, 32], strides = [1, 1]} : vector<2x96xf32> to vector<2x32xf32>
    %16 = vector.extract_strided_slice %11 {offsets = [0, 64], sizes = [2, 32], strides = [1, 1]} : vector<2x96xf32> to vector<2x32xf32>
    %c0_6 = arith.constant 0 : index
    %c0_7 = arith.constant 0 : index
    %17 = vector.load %arg1[%c0_6, %c0_7] : memref<2x32xf32, #tpu.memory_space<vmem>>, vector<2x32xf32>
    %18 = arith.mulf %15, %17 : vector<2x32xf32>
    %19 = arith.mulf %14, %13 : vector<2x32xf32>
    %20 = arith.addf %18, %19 : vector<2x32xf32>
    %21 = math.tanh %20 : vector<2x32xf32>
    %22 = arith.mulf %16, %21 : vector<2x32xf32>
    %23 = tpu.concatenate %22, %22, %22, %22 in 1 : vector<2x32xf32>, vector<2x32xf32>, vector<2x32xf32>, vector<2x32xf32> -> vector<2x128xf32>
    %c0_8 = arith.constant 0 : index
    %c0_9 = arith.constant 0 : index
    %24 = vector.load %arg4[%c0_8, %c0_9] : memref<2x128xf32, #tpu.memory_space<vmem>>, vector<2x128xf32>
    tpu.vector_store %arg4[%c0_8, %c0_9], %23 {strides = array<i32>} : memref<2x128xf32, #tpu.memory_space<vmem>>, vector<2x128xf32>,
    %25 = tpu.concatenate %22, %20 in 1 : vector<2x32xf32>, vector<2x32xf32> -> vector<2x64xf32>
    %c0_10 = arith.constant 0 : index
    %c0_11 = arith.constant 0 : index
    %26 = vector.load %arg5[%c0_10, %c0_11] : memref<2x64xf32, #tpu.memory_space<vmem>>, vector<2x64xf32>
    tpu.vector_store %arg5[%c0_10, %c0_11], %25 {strides = array<i32>} : memref<2x64xf32, #tpu.memory_space<vmem>>, vector<2x64xf32>,
    return
  }
}

</mosaic_0001>

<bundles_post_ra>
// kernel: tpu_custom_call.1
= control target key start
LH: loop header
LB: loop body
LE: loop exit
PB: predicated region body
PF: predicated region fallthrough
CT: control target
= control target key end

     0   :  { %11 = vsyncpa [#allocation3], 0  ;;  %s480_s0 = inlined_call_operand.hbm [shape: f32[2,64], index: 0, kind: input, shape index: {}]   ;;  %s481_s1 = inlined_call_operand.vmem [shape: f32[2,32], index: 1, kind: input, shape index: {}]   ;;  %s482_s2 = inlined_call_operand.hbm [shape: f32[64,128], index: 2, kind: input, shape index: {}]   ;;  %s483_s3 = inlined_call_operand.vmem [shape: f32[1,128], index: 3, kind: input, shape index: {}]   ;;  %s484_s4 = inlined_call_operand.hbm [shape: f32[2,128], index: 4, kind: output, shape index: {0}]   ;;  %s485_s5 = inlined_call_operand.hbm [shape: f32[2,64], index: 5, kind: output, shape index: {1}]  }
   0x1   :  { %12 = vsyncpa [#allocation6], 0 }
   0x2   :  { %13 = vsyncpa [#allocation4], 0 }
   0x3   :  { %14 = vsyncpa [#allocation9], 0  ;;  %s374_s18 = smov [#allocation2]   ;;  %s375_s20 = smov [#allocation5]  }
   0x4   :  { %s21_s19 = sshll.u32 %s374_s18, 4  ;;  %s32_s21 = sshll.u32 %s375_s20, 4  ;;  %s22_s19 = int_to_ptr.vmem [resolvable:$true] %s21_s19  ;;  %s416_s21 = int_to_ptr.vmem [resolvable:$true] %s32_s21 }
   0x5   :  { %s278_s24 = scalar_lea.hbm %s480_s0, 32 }
   0x6   :  { %p279_p0 = scmp.ne.s32.totalorder %s480_s0, %s278_s24  ;;  %p282_p1 = scmp.lt.u32.totalorder %s278_s24, %s480_s0 }
   0x8   :  { %p284_p2 = pnand %p282_p1, %p279_p0 }
   0xa   :  { %287 = shalt.err (!%p284_p2)
}
   0xb   :  { %s288_s29 = scalar_lea.vmem %s22_s19, 32  ;;  %p293_p4 = scmp.lt.s32.totalorder %s22_s19, %s22_s19 }
   0xc   :  { %p289_p3 = scmp.ne.s32.totalorder %s22_s19, %s288_s29  ;;  %p294_p5 = scmp.lt.s32.totalorder %s288_s29, %s288_s29 }
   0xe   :  { %p295_p6 = por %p294_p5, %p293_p4 }
  0x10   :  { %p296_p7 = pnand %p295_p6, %p289_p3 }
  0x12   :  { %299 = shalt.err (!%p296_p7)
}
  0x13   :  { %24 = dma.hbm_to_vmem [thread:$0]  %s480_s0, 32, %s22_s19, [#allocation3]  }
  0x14   :  { %s300_s9 = scalar_lea.hbm %s482_s2, 1024 }
  0x15   :  { %p301_p8 = scmp.ne.s32.totalorder %s482_s2, %s300_s9  ;;  %p304_p9 = scmp.lt.u32.totalorder %s300_s9, %s482_s2 }
  0x17   :  { %p306_p10 = pnand %p304_p9, %p301_p8 }
  0x19   :  { %309 = shalt.err (!%p306_p10)
}
  0x1a   :  { %s310_s14 = scalar_lea.vmem %s416_s21, 1024  ;;  %p315_p12 = scmp.lt.s32.totalorder %s416_s21, %s416_s21 }
  0x1b   :  { %p311_p11 = scmp.ne.s32.totalorder %s416_s21, %s310_s14  ;;  %p316_p13 = scmp.lt.s32.totalorder %s310_s14, %s310_s14 }
  0x1d   :  { %p317_p0 = por %p316_p13, %p315_p12 }
  0x1f   :  { %p318_p1 = pnand %p317_p0, %p311_p11 }
  0x21   :  { %321 = shalt.err (!%p318_p1)
}
  0x22   :  { %s376_s0 = smov 128   ;;  %s377_s15 = smov 8  }
  0x23   :  { %38 = dma.hbm_to_vmem [thread:$0]  %s482_s2, 1024, %s416_s21, [#allocation6], %s376_s0, %s376_s0, %s377_s15  }
  0x24   :  { %366 = dma.done.wait [#allocation3], 32  }
  0x25   :  { %367 = vsyncadd [#allocation3], 4294967264 }
  0x26   :  { %368 = dma.done.wait [#allocation6], 1024  }
  0x27   :  { %369 = vsyncadd [#allocation6], 4294966272  ;;  %v378_v0 = vmov 0.0|0.0   ;;  %vm379_vm0 = vmmov 0   ;;  %v380_v1 = vmov 0.0   ;;  %v48_v2 = vld [vmem:[#allocation5] sm:$0xff] }
  0x28   :  { %246 = vmatprep.subr.bf16.mxu0 %v378_v0  ;;  %243 = vmatprep.mubr.msk.f32.mxu0 %vm379_vm0, %v380_v1  ;;  %v49_v3 = vld [vmem:[#allocation5 + $0x8] sm:$0xff]  ;;  %v50_v4 = vld [vmem:[#allocation5 + $0x10] sm:$0xff]  ;;  %v51_v6 = vld [vmem:[#allocation5 + $0x18] sm:$0xff]  ;;  %vm63_vm1 = vcmask 523264   ;;  %s381_s19 = smov 32   ;;  %s384_s22 = smov [#allocation8]  }
  0x29   :  { %v247_v5 = vpack.c.bf16 %v49_v3, %v48_v2  ;;  %v250_v7 = vpack.c.bf16 %v51_v6, %v50_v4  ;;  %v52_v8 = vld [vmem:[#allocation5 + $0x20] sm:$0xff]  ;;  %v53_v9 = vld [vmem:[#allocation5 + $0x28] sm:$0xff]  ;;  %v54_v11 = vld [vmem:[#allocation5 + $0x30] sm:$0xff]  ;;  %s201_s23 = sshll.u32 %s384_s22, 4  ;;  %vm176_vm2 = vcmask 261120   ;;  %vm183_vm3 = vcmask 517120   ;;  %s202_s23 = int_to_ptr.vmem [resolvable:$true] %s201_s23 }
  0x2a   :  { %v253_v10 = vpack.c.bf16 %v53_v9, %v52_v8  ;;  %v55_v12 = vld [vmem:[#allocation5 + $0x38] sm:$0xff]  ;;  %s385_s24 = smov [#allocation7]   ;;  %vm179_vm4 = vcmask 785408   ;;  %s322_s26 = scalar_lea.vmem %s202_s23, 32 }
  0x2b   :  { %248 = vmatpush3.bf16.msra.mxu0 %v247_v5  ;;  %v256_v13 = vpack.c.bf16 %v55_v12, %v54_v11  ;;  %v47_v14 = vld [vmem:[#allocation2] sm:$0x3]  ;;  %s191_s25 = sshll.u32 %s385_s24, 4  ;;  %p323_p2 = scmp.ne.s32.totalorder %s202_s23, %s322_s26  ;;  %s192_s25 = int_to_ptr.vmem [resolvable:$true] %s191_s25 }
  0x2c   :  { %249 = vmatprep.subr.bf16.mxu0 %v378_v0  ;;  %v215_v15 = vld [vmem:[%s483_s3] ss:$0 sm:$0xff]  ;;  %s383_s3 = smov 64   ;;  %p327_p3 = scmp.lt.s32.totalorder %s202_s23, %s202_s23 }
  0x2d   :  { %v144_v20 = vld [vmem:[%s481_s1] sm:$0x3]  ;;  %s382_s1 = smov 96   ;;  %p328_p4 = scmp.lt.s32.totalorder %s322_s26, %s322_s26 }
  0x2f   :  { %251 = vmatpush3.bf16.msra.mxu0 %v250_v7  ;;  %p329_p5 = por %p328_p4, %p327_p3 }
  0x30   :  { %252 = vmatprep.subr.bf16.mxu0 %v378_v0 }
  0x31   :  { %p330_p6 = pnand %p329_p5, %p323_p2 }
  0x33   :  { %254 = vmatpush3.bf16.msra.mxu0 %v253_v10 }
  0x34   :  { %255 = vmatprep.subr.bf16.mxu0 %v378_v0 }
  0x37   :  { %257 = vmatpush3.bf16.msra.mxu0 %v256_v13 }
  0x3a   :  { %244 = vmatmul.mubr.msk.f32.vlgmr.msra.gmra.mrb[0].mxu0 %vm63_vm1, %v47_v14 }
 0x10d   :  { %v133_v16 = vpop.f32.mrb[0].mxu0 }
 0x10e   :  { %v134_v17 = vadd.f32 %v215_v15, %v133_v16  ;;  %v245_v18 = vpop.f32.mrb[1].mxu0 }
 0x110   :  { %270 = vtanh.f32 %v134_v17  ;;  %v217_v21 = vmul.f32 -1.442695, %v134_v17 }
 0x112   :  { %272 = vpow2.f32 %v217_v21 }
 0x11a   :  { %v271_v19 = vpop.eup %270 }
 0x11b   :  { %151 = vrot.lane.b32.xlu0 %v271_v19, %s381_s19 }
 0x11c   :  { %v273_v22 = vpop.eup %272 }
 0x11d   :  { %v140_v23 = vadd.f32 1.0, %v273_v22 }
 0x11f   :  { %146 = vrot.lane.b32.xlu0 %v144_v20, %s381_s19  ;;  %274 = vrcp.f32 %v140_v23 }
 0x129   :  { %v275_v24 = vpop.eup %274 }
 0x18d   :  { %v152_v25 = vpop.permute.xlu0 %151 }
 0x18e   :  { %v154_v26 = vmul.f32 %v275_v24, %v152_v25 }
 0x190   :  { %156 = vrot.lane.b32.xlu1 %v154_v26, %s381_s19 }
 0x191   :  { %v147_v27 = vpop.permute.xlu0 %146 }
 0x192   :  { %v149_v28 = vmul.f32 %v275_v24, %v147_v27 }
 0x202   :  { %v157_v29 = vpop.permute.xlu1 %156 }
 0x203   :  { %v159_v30 = vadd.f32 %v157_v29, %v149_v28 }
 0x205   :  { %276 = vtanh.f32 %v159_v30 }
 0x20f   :  { %v277_v31 = vpop.eup %276 }
 0x210   :  { %162 = vrot.lane.b32.xlu1 %v277_v31, %s381_s19 }
 0x282   :  { %v163_v32 = vpop.permute.xlu1 %162 }
 0x283   :  { %v165_v33 = vmul.f32 %v275_v24, %v163_v32 }
 0x285   :  { %170 = vrot.lane.b32.xlu1 %v165_v33, %s382_s1  ;;  %167 = vrot.lane.b32.xlu0 %v165_v33, %s383_s3 }
 0x289   :  { %173 = vrot.lane.b32.xlu0 %v165_v33, %s381_s19 }
 0x2f7   :  { %v171_v34 = vpop.permute.xlu1 %170  ;;  %v168_v35 = vpop.permute.xlu0 %167 }
 0x2f8   :  { %v177_v36 = vsel %vm176_vm2, %v168_v35, %v171_v34  ;;  %v182_v37 = vsel %vm176_vm2, %v168_v35, %v159_v30 }
 0x2f9   :  { %184 = vst.msk [vmem:[#allocation8] sm:$0x3] %vm183_vm3, %v182_v37 }
 0x2fa   :  { %333 = shalt.err (!%p330_p6)
}
 0x2fb   :  { %s334_s29 = scalar_lea.hbm %s485_s5, 32 }
 0x2fc   :  { %p335_p7 = scmp.ne.s32.totalorder %s485_s5, %s334_s29  ;;  %p338_p8 = scmp.lt.u32.totalorder %s334_s29, %s485_s5 }
 0x2fe   :  { %p340_p9 = pnand %p338_p8, %p335_p7 }
 0x300   :  { %343 = shalt.err (!%p340_p9)
}
 0x301   :  { %204 = dma.vmem_to_hbm [thread:$0]  %s202_s23, 32, %s485_s5, [#allocation9]   ;;  %v178_v38 = vsel %vm63_vm1, %v177_v36, %v165_v33  ;;  %v174_v39 = vpop.permute.xlu0 %173 }
 0x302   :  { %v180_v40 = vsel %vm179_vm4, %v178_v38, %v174_v39  ;;  %s344_s11 = scalar_lea.vmem %s192_s25, 32  ;;  %p349_p11 = scmp.lt.s32.totalorder %s192_s25, %s192_s25 }
 0x303   :  { %181 = vst [vmem:[#allocation7] sm:$0x3] %v180_v40  ;;  %p345_p10 = scmp.ne.s32.totalorder %s192_s25, %s344_s11  ;;  %p350_p12 = scmp.lt.s32.totalorder %s344_s11, %s344_s11 }
 0x305   :  { %p351_p13 = por %p350_p12, %p349_p11 }
 0x307   :  { %p352_p0 = pnand %p351_p13, %p345_p10 }
 0x309   :  { %355 = shalt.err (!%p352_p0)
}
 0x30a   :  { %s356_s14 = scalar_lea.hbm %s484_s4, 32 }
 0x30b   :  { %p357_p1 = scmp.ne.s32.totalorder %s484_s4, %s356_s14  ;;  %p360_p2 = scmp.lt.u32.totalorder %s356_s14, %s484_s4 }
 0x30d   :  { %p362_p3 = pnand %p360_p2, %p357_p1 }
 0x30f   :  { %365 = shalt.err (!%p362_p3)
}
 0x310   :  { %194 = dma.vmem_to_hbm [thread:$0]  %s192_s25, 32, %s484_s4, [#allocation4]  }
 0x311   :  { %370 = dma.done.wait [#allocation4], 32  }
 0x312   :  { %371 = vsyncadd [#allocation4], 4294967264 }
 0x313   :  { %372 = dma.done.wait [#allocation9], 32  }
 0x314   :  { %373 = vsyncadd [#allocation9], 4294967264 }
 0x315   :  { %211 = vsyncpa [#allocation3], 1 }
 0x316   :  { %212 = vsyncpa [#allocation6], 1 }
 0x317   :  { %213 = vsyncpa [#allocation4], 1 }
 0x318   :  { %214 = vsyncpa [#allocation9], 1 }

</bundles_post_ra>
